<compile_context>
chip_gen: v7x
topology: tpu7x:2x2x1
jax: 0.10.0
libtpu: 0.0.40
codegen_flags: <defaults>
</compile_context>

<pallas_src>
import functools

import jax
import jax.numpy as jnp
from jax.experimental import pallas as pl
from jax.experimental.pallas import tpu as pltpu


def _sfeb_fused_kernel(x_ref, masks_ref, w1_ref, b1_ref, w2_ref, b2_ref,
                       out1_ref, out2_ref, patches_ref, *, H, W, emb):
    """Fused conv1(1->emb) + conv2(emb->emb), 3x3, stride 1, padding 1.

    Shapes (per grid step = one batch element), N = H*W:
      x_ref:       (1, 1, N)      flattened input image
      masks_ref:   (9, N)         per-tap boundary validity masks (f32 0/1)
      w1_ref:      (emb, 9)       conv1 weights, [cout, tap]
      b1_ref:      (emb, 1)
      w2_ref:      (emb, 9*emb)   conv2 weights, [cout, tap*emb + cin]
      b2_ref:      (emb, 1)
      out1_ref:    (1, emb, N)    F_minus_1 (lane-dense flattened NCHW)
      out2_ref:    (1, emb, N)    F0
      patches_ref: (9*emb, N)     im2col scratch (reused by both convs)
    """
    N = H * W

    def build_patches(src, cin):
        # src: (cin, N). Writes rows [0, 9*cin) of patches_ref with the 9
        # shifted-and-masked taps (im2col in the lane-dense layout).
        for tap in range(9):
            dy, dx = tap // 3 - 1, tap % 3 - 1
            s = dy * W + dx                      # flat-index shift of this tap
            if s == 0:
                shifted = src
            else:
                # rolled[p] == src[(p + s) mod N]; the mask zeroes positions
                # whose (y+dy, x+dx) falls outside the image (zero padding).
                rolled = pltpu.roll(src, shift=(-s) % N, axis=1)
                shifted = rolled * masks_ref[tap:tap + 1, :]
            patches_ref[tap * cin:(tap + 1) * cin, :] = shifted

    # ---- conv1: 1 -> emb -------------------------------------------------
    build_patches(x_ref[0], 1)                                   # rows 0..8
    f1 = jnp.dot(w1_ref[...], patches_ref[0:9, :],
                 preferred_element_type=jnp.float32) + b1_ref[...]
    out1_ref[0] = f1.astype(out1_ref.dtype)

    # ---- conv2: emb -> emb (consumes f1 directly from vregs/VMEM) ---------
    build_patches(f1, emb)                                       # rows 0..9*emb
    f2 = jnp.dot(w2_ref[...], patches_ref[...],
                 preferred_element_type=jnp.float32) + b2_ref[...]
    out2_ref[0] = f2.astype(out2_ref.dtype)


@jax.jit
def sfeb_forward(x_nchw, w1_mat, b1_col, w2_mat, b2_col):
    """x_nchw: (B, 1, H, W) f32. Returns (F_minus_1, F0), both (B, emb, H, W)."""
    B, Cin, H, W = x_nchw.shape
    assert Cin == 1, "SFEB conv1 expects a single input channel"
    emb = w1_mat.shape[0]
    N = H * W

    # Cin == 1  =>  NCHW and NHWC are the same bits; a contiguous reshape
    # replaces the old transpose (no HBM pass).
    x_flat = x_nchw.reshape(B, 1, N).astype(jnp.float32)

    # Per-tap boundary masks (compile-time constants under jit):
    # tap = 3*(dy+1) + (dx+1).
    ys = jnp.arange(H).reshape(H, 1)
    xs = jnp.arange(W).reshape(1, W)
    masks = []
    for tap in range(9):
        dy, dx = tap // 3 - 1, tap % 3 - 1
        valid = ((ys + dy >= 0) & (ys + dy < H) &
                 (xs + dx >= 0) & (xs + dx < W))
        masks.append(valid.astype(jnp.float32).reshape(N))
    tap_masks = jnp.stack(masks, axis=0)                         # (9, N)

    kernel = functools.partial(_sfeb_fused_kernel, H=H, W=W, emb=emb)

    # Grid over batch, marked "parallel": on v7x this shards the two batch
    # elements across the two TensorCores; on single-TC v5e/v6e the extra grid
    # step costs ~0.35us, negligible next to the fusion/lane-density wins.
    # TODO(synk): at realistic SR sizes (H=W>=256, emb>=64) add a row-block
    # grid axis with a 2-row halo and set vmem_limit_bytes (v7x: 64 MiB VMEM).
    out1, out2 = pl.pallas_call(
        kernel,
        out_shape=(jax.ShapeDtypeStruct((B, emb, N), jnp.float32),
                   jax.ShapeDtypeStruct((B, emb, N), jnp.float32)),
        grid_spec=pltpu.PrefetchScalarGridSpec(
            num_scalar_prefetch=0,
            grid=(B,),
            in_specs=[
                pl.BlockSpec((1, 1, N), lambda b: (b, 0, 0)),
                pl.BlockSpec((9, N), lambda b: (0, 0)),
                pl.BlockSpec((emb, 9), lambda b: (0, 0)),
                pl.BlockSpec((emb, 1), lambda b: (0, 0)),
                pl.BlockSpec((emb, 9 * emb), lambda b: (0, 0)),
                pl.BlockSpec((emb, 1), lambda b: (0, 0)),
            ],
            out_specs=[
                pl.BlockSpec((1, emb, N), lambda b: (b, 0, 0)),
                pl.BlockSpec((1, emb, N), lambda b: (b, 0, 0)),
            ],
            scratch_shapes=[pltpu.VMEM((9 * emb, N), jnp.float32)],
        ),
        compiler_params=pltpu.CompilerParams(
            dimension_semantics=("parallel",),
        ),
    )(x_flat, tap_masks, w1_mat, b1_col, w2_mat, b2_col)

    # (B, emb, H*W) -> (B, emb, H, W) is a contiguous (free) reshape: NCHW out.
    return out1.reshape(B, emb, H, W), out2.reshape(B, emb, H, W)


class ShallowFeatureExtractionBlockPallas:
    """JAX/Pallas re-implementation of the PyTorch SFEB (two 3x3 same-convs)."""
    # TODO(synk): the logger.info calls of the PyTorch module are omitted.

    def __init__(self, config, key):
        emb = config["emb_size"]
        k1, k2, k3, k4 = jax.random.split(key, 4)
        # Synthetic parameters in HWIO (kept for the reference check).
        self.w1 = jax.random.normal(k1, (3, 3, 1, emb), jnp.float32) * 0.1
        self.b1 = jax.random.normal(k2, (emb,), jnp.float32) * 0.1
        self.w2 = jax.random.normal(k3, (3, 3, emb, emb), jnp.float32) * 0.1
        self.b2 = jax.random.normal(k4, (emb,), jnp.float32) * 0.1
        # Kernel-layout parameters (computed once at init, not per call):
        #   w1_mat[co, tap]          = w1[kh, kw, 0, co]
        #   w2_mat[co, tap*emb + ci] = w2[kh, kw, ci, co]
        self.w1_mat = jnp.transpose(self.w1.reshape(9, emb))               # (emb, 9)
        self.w2_mat = jnp.transpose(self.w2.reshape(9, emb, emb),
                                    (2, 0, 1)).reshape(emb, 9 * emb)       # (emb, 9*emb)
        self.b1_col = self.b1.reshape(emb, 1)
        self.b2_col = self.b2.reshape(emb, 1)

    def __call__(self, x_nchw):
        return sfeb_forward(x_nchw.astype(jnp.float32),
                            self.w1_mat, self.b1_col,
                            self.w2_mat, self.b2_col)


if __name__ == "__main__":
    key = jax.random.PRNGKey(0)
    k_in, k_params = jax.random.split(key)

    config = {"emb_size": 8}
    B, C, H, W = 2, 1, 16, 16  # conv1 expects 1 input channel
    x = jax.random.normal(k_in, (B, C, H, W), jnp.float32)

    sfeb = ShallowFeatureExtractionBlockPallas(config, k_params)
    F_minus_1, F0 = sfeb(x)
    jax.block_until_ready((F_minus_1, F0))

    # Sanity check against pure-JAX reference convs (NHWC/HWIO -> NCHW).
    x_nhwc = jnp.transpose(x, (0, 2, 3, 1))
    ref1 = jax.lax.conv_general_dilated(
        x_nhwc, sfeb.w1, (1, 1), "SAME",
        dimension_numbers=("NHWC", "HWIO", "NHWC")) + sfeb.b1
    ref2 = jax.lax.conv_general_dilated(
        ref1, sfeb.w2, (1, 1), "SAME",
        dimension_numbers=("NHWC", "HWIO", "NHWC")) + sfeb.b2
    ref1 = jnp.transpose(ref1, (0, 3, 1, 2))
    ref2 = jnp.transpose(ref2, (0, 3, 1, 2))

    assert F_minus_1.shape == (B, config["emb_size"], H, W)
    assert F0.shape == (B, config["emb_size"], H, W)
    assert jnp.allclose(F_minus_1, ref1, atol=1e-4, rtol=1e-4)
    assert jnp.allclose(F0, ref2, atol=1e-4, rtol=1e-4)

    print("KERNEL_OK")
</pallas_src>

<mosaic_0001>
module attributes {stable_mosaic.version = 11 : i64} {
  func.func @_sfeb_fused_kernel(%arg0: i32, %arg1: memref<1x1x256xf32, #tpu.memory_space<vmem>>, %arg2: memref<9x256xf32, #tpu.memory_space<vmem>>, %arg3: memref<8x9xf32, #tpu.memory_space<vmem>>, %arg4: memref<8x1xf32, #tpu.memory_space<vmem>>, %arg5: memref<8x72xf32, #tpu.memory_space<vmem>>, %arg6: memref<8x1xf32, #tpu.memory_space<vmem>>, %arg7: memref<1x8x256xf32, #tpu.memory_space<vmem>>, %arg8: memref<1x8x256xf32, #tpu.memory_space<vmem>>, %arg9: memref<72x256xf32, #tpu.memory_space<vmem>>) attributes {dimension_semantics = [#tpu.dimension_semantics<parallel>], iteration_bounds = array<i64: 2>, scalar_prefetch = 0 : i64, scratch_operands = 1 : i64, tpu.core_type = #tpu.core_type<tc>, window_params = [{transform_indices = @transform_0, window_bounds = array<i64: 1, 1, 256>}, {pipeline_mode = #tpu.pipeline_mode<synchronous>, transform_indices = @transform_1, window_bounds = array<i64: 9, 256>}, {pipeline_mode = #tpu.pipeline_mode<synchronous>, transform_indices = @transform_2, window_bounds = array<i64: 8, 9>}, {pipeline_mode = #tpu.pipeline_mode<synchronous>, transform_indices = @transform_3, window_bounds = array<i64: 8, 1>}, {pipeline_mode = #tpu.pipeline_mode<synchronous>, transform_indices = @transform_4, window_bounds = array<i64: 8, 72>}, {pipeline_mode = #tpu.pipeline_mode<synchronous>, transform_indices = @transform_5, window_bounds = array<i64: 8, 1>}, {transform_indices = @transform_6, window_bounds = array<i64: 1, 8, 256>}, {transform_indices = @transform_7, window_bounds = array<i64: 1, 8, 256>}]} {
    %c0 = arith.constant 0 : index
    %c0_0 = arith.constant 0 : index
    %c0_1 = arith.constant 0 : index
    %0 = vector.load %arg1[%c0, %c0_0, %c0_1] : memref<1x1x256xf32, #tpu.memory_space<vmem>>, vector<1x1x256xf32>
    %1 = vector.shape_cast %0 : vector<1x1x256xf32> to vector<1x256xf32>
    %c17_i32 = arith.constant 17 : i32
    %2 = tpu.dynamic_rotate %1 by %c17_i32 dim 1 : vector<1x256xf32>, i32 -> vector<1x256xf32>
    %c0_2 = arith.constant 0 : index
    %c0_3 = arith.constant 0 : index
    %3 = vector.load %arg2[%c0_2, %c0_3] : memref<9x256xf32, #tpu.memory_space<vmem>>, vector<1x256xf32>
    %4 = arith.mulf %2, %3 : vector<1x256xf32>
    %c0_4 = arith.constant 0 : index
    %c0_5 = arith.constant 0 : index
    %5 = vector.load %arg9[%c0_4, %c0_5] : memref<72x256xf32, #tpu.memory_space<vmem>>, vector<1x256xf32>
    tpu.vector_store %arg9[%c0_4, %c0_5], %4 {strides = array<i32>} : memref<72x256xf32, #tpu.memory_space<vmem>>, vector<1x256xf32>,
    %c16_i32 = arith.constant 16 : i32
    %6 = tpu.dynamic_rotate %1 by %c16_i32 dim 1 : vector<1x256xf32>, i32 -> vector<1x256xf32>
    %c1 = arith.constant 1 : index
    %c0_6 = arith.constant 0 : index
    %7 = vector.load %arg2[%c1, %c0_6] : memref<9x256xf32, #tpu.memory_space<vmem>>, vector<1x256xf32>
    %8 = arith.mulf %6, %7 : vector<1x256xf32>
    %c1_7 = arith.constant 1 : index
    %c0_8 = arith.constant 0 : index
    %9 = vector.load %arg9[%c1_7, %c0_8] : memref<72x256xf32, #tpu.memory_space<vmem>>, vector<1x256xf32>
    tpu.vector_store %arg9[%c1_7, %c0_8], %8 {strides = array<i32>} : memref<72x256xf32, #tpu.memory_space<vmem>>, vector<1x256xf32>,
    %c15_i32 = arith.constant 15 : i32
    %10 = tpu.dynamic_rotate %1 by %c15_i32 dim 1 : vector<1x256xf32>, i32 -> vector<1x256xf32>
    %c2 = arith.constant 2 : index
    %c0_9 = arith.constant 0 : index
    %11 = vector.load %arg2[%c2, %c0_9] : memref<9x256xf32, #tpu.memory_space<vmem>>, vector<1x256xf32>
    %12 = arith.mulf %10, %11 : vector<1x256xf32>
    %c2_10 = arith.constant 2 : index
    %c0_11 = arith.constant 0 : index
    %13 = vector.load %arg9[%c2_10, %c0_11] : memref<72x256xf32, #tpu.memory_space<vmem>>, vector<1x256xf32>
    tpu.vector_store %arg9[%c2_10, %c0_11], %12 {strides = array<i32>} : memref<72x256xf32, #tpu.memory_space<vmem>>, vector<1x256xf32>,
    %c1_i32 = arith.constant 1 : i32
    %14 = tpu.dynamic_rotate %1 by %c1_i32 dim 1 : vector<1x256xf32>, i32 -> vector<1x256xf32>
    %c3 = arith.constant 3 : index
    %c0_12 = arith.constant 0 : index
    %15 = vector.load %arg2[%c3, %c0_12] : memref<9x256xf32, #tpu.memory_space<vmem>>, vector<1x256xf32>
    %16 = arith.mulf %14, %15 : vector<1x256xf32>
    %c3_13 = arith.constant 3 : index
    %c0_14 = arith.constant 0 : index
    %17 = vector.load %arg9[%c3_13, %c0_14] : memref<72x256xf32, #tpu.memory_space<vmem>>, vector<1x256xf32>
    tpu.vector_store %arg9[%c3_13, %c0_14], %16 {strides = array<i32>} : memref<72x256xf32, #tpu.memory_space<vmem>>, vector<1x256xf32>,
    %c4 = arith.constant 4 : index
    %c0_15 = arith.constant 0 : index
    %18 = vector.load %arg9[%c4, %c0_15] : memref<72x256xf32, #tpu.memory_space<vmem>>, vector<1x256xf32>
    tpu.vector_store %arg9[%c4, %c0_15], %1 {strides = array<i32>} : memref<72x256xf32, #tpu.memory_space<vmem>>, vector<1x256xf32>,
    %c255_i32 = arith.constant 255 : i32
    %19 = tpu.dynamic_rotate %1 by %c255_i32 dim 1 : vector<1x256xf32>, i32 -> vector<1x256xf32>
    %c5 = arith.constant 5 : index
    %c0_16 = arith.constant 0 : index
    %20 = vector.load %arg2[%c5, %c0_16] : memref<9x256xf32, #tpu.memory_space<vmem>>, vector<1x256xf32>
    %21 = arith.mulf %19, %20 : vector<1x256xf32>
    %c5_17 = arith.constant 5 : index
    %c0_18 = arith.constant 0 : index
    %22 = vector.load %arg9[%c5_17, %c0_18] : memref<72x256xf32, #tpu.memory_space<vmem>>, vector<1x256xf32>
    tpu.vector_store %arg9[%c5_17, %c0_18], %21 {strides = array<i32>} : memref<72x256xf32, #tpu.memory_space<vmem>>, vector<1x256xf32>,
    %c241_i32 = arith.constant 241 : i32
    %23 = tpu.dynamic_rotate %1 by %c241_i32 dim 1 : vector<1x256xf32>, i32 -> vector<1x256xf32>
    %c6 = arith.constant 6 : index
    %c0_19 = arith.constant 0 : index
    %24 = vector.load %arg2[%c6, %c0_19] : memref<9x256xf32, #tpu.memory_space<vmem>>, vector<1x256xf32>
    %25 = arith.mulf %23, %24 : vector<1x256xf32>
    %c6_20 = arith.constant 6 : index
    %c0_21 = arith.constant 0 : index
    %26 = vector.load %arg9[%c6_20, %c0_21] : memref<72x256xf32, #tpu.memory_space<vmem>>, vector<1x256xf32>
    tpu.vector_store %arg9[%c6_20, %c0_21], %25 {strides = array<i32>} : memref<72x256xf32, #tpu.memory_space<vmem>>, vector<1x256xf32>,
    %c240_i32 = arith.constant 240 : i32
    %27 = tpu.dynamic_rotate %1 by %c240_i32 dim 1 : vector<1x256xf32>, i32 -> vector<1x256xf32>
    %c7 = arith.constant 7 : index
    %c0_22 = arith.constant 0 : index
    %28 = vector.load %arg2[%c7, %c0_22] : memref<9x256xf32, #tpu.memory_space<vmem>>, vector<1x256xf32>
    %29 = arith.mulf %27, %28 : vector<1x256xf32>
    %c7_23 = arith.constant 7 : index
    %c0_24 = arith.constant 0 : index
    %30 = vector.load %arg9[%c7_23, %c0_24] : memref<72x256xf32, #tpu.memory_space<vmem>>, vector<1x256xf32>
    tpu.vector_store %arg9[%c7_23, %c0_24], %29 {strides = array<i32>} : memref<72x256xf32, #tpu.memory_space<vmem>>, vector<1x256xf32>,
    %c239_i32 = arith.constant 239 : i32
    %31 = tpu.dynamic_rotate %1 by %c239_i32 dim 1 : vector<1x256xf32>, i32 -> vector<1x256xf32>
    %c8 = arith.constant 8 : index
    %c0_25 = arith.constant 0 : index
    %32 = vector.load %arg2[%c8, %c0_25] : memref<9x256xf32, #tpu.memory_space<vmem>>, vector<1x256xf32>
    %33 = arith.mulf %31, %32 : vector<1x256xf32>
    %c8_26 = arith.constant 8 : index
    %c0_27 = arith.constant 0 : index
    %34 = vector.load %arg9[%c8_26, %c0_27] : memref<72x256xf32, #tpu.memory_space<vmem>>, vector<1x256xf32>
    tpu.vector_store %arg9[%c8_26, %c0_27], %33 {strides = array<i32>} : memref<72x256xf32, #tpu.memory_space<vmem>>, vector<1x256xf32>,
    %c0_28 = arith.constant 0 : index
    %c0_29 = arith.constant 0 : index
    %35 = vector.load %arg3[%c0_28, %c0_29] : memref<8x9xf32, #tpu.memory_space<vmem>>, vector<8x9xf32>
    %c0_30 = arith.constant 0 : index
    %c0_31 = arith.constant 0 : index
    %36 = vector.load %arg9[%c0_30, %c0_31] : memref<72x256xf32, #tpu.memory_space<vmem>>, vector<9x256xf32>
    %cst = arith.constant dense<0.000000e+00> : vector<8x256xf32>
    %37 = tpu.matmul %35, %36, %cst {dimension_numbers = #tpu.dot_dimension_numbers<[1], [0], [0], [1], [0, 0, 1, 1], [], []>} : vector<8x9xf32>, vector<9x256xf32>, vector<8x256xf32> -> vector<8x256xf32>
    %c0_32 = arith.constant 0 : index
    %c0_33 = arith.constant 0 : index
    %38 = vector.load %arg4[%c0_32, %c0_33] : memref<8x1xf32, #tpu.memory_space<vmem>>, vector<8x1xf32>
    %39 = vector.broadcast %38 : vector<8x1xf32> to vector<8x256xf32>
    %40 = arith.addf %37, %39 : vector<8x256xf32>
    %c0_34 = arith.constant 0 : index
    %c0_35 = arith.constant 0 : index
    %c0_36 = arith.constant 0 : index
    %41 = vector.load %arg7[%c0_34, %c0_35, %c0_36] : memref<1x8x256xf32, #tpu.memory_space<vmem>>, vector<1x8x256xf32>
    %42 = vector.shape_cast %41 : vector<1x8x256xf32> to vector<8x256xf32>
    %43 = vector.shape_cast %40 : vector<8x256xf32> to vector<1x8x256xf32>
    tpu.vector_store %arg7[%c0_34, %c0_35, %c0_36], %43 {strides = array<i32>} : memref<1x8x256xf32, #tpu.memory_space<vmem>>, vector<1x8x256xf32>,
    %c17_i32_37 = arith.constant 17 : i32
    %44 = tpu.dynamic_rotate %40 by %c17_i32_37 dim 1 : vector<8x256xf32>, i32 -> vector<8x256xf32>
    %c0_38 = arith.constant 0 : index
    %c0_39 = arith.constant 0 : index
    %45 = vector.load %arg2[%c0_38, %c0_39] : memref<9x256xf32, #tpu.memory_space<vmem>>, vector<1x256xf32>
    %46 = vector.broadcast %45 : vector<1x256xf32> to vector<8x256xf32>
    %47 = arith.mulf %44, %46 : vector<8x256xf32>
    %c0_40 = arith.constant 0 : index
    %c0_41 = arith.constant 0 : index
    %48 = vector.load %arg9[%c0_40, %c0_41] : memref<72x256xf32, #tpu.memory_space<vmem>>, vector<8x256xf32>
    tpu.vector_store %arg9[%c0_40, %c0_41], %47 {strides = array<i32>} : memref<72x256xf32, #tpu.memory_space<vmem>>, vector<8x256xf32>,
    %c16_i32_42 = arith.constant 16 : i32
    %49 = tpu.dynamic_rotate %40 by %c16_i32_42 dim 1 : vector<8x256xf32>, i32 -> vector<8x256xf32>
    %c1_43 = arith.constant 1 : index
    %c0_44 = arith.constant 0 : index
    %50 = vector.load %arg2[%c1_43, %c0_44] : memref<9x256xf32, #tpu.memory_space<vmem>>, vector<1x256xf32>
    %51 = vector.broadcast %50 : vector<1x256xf32> to vector<8x256xf32>
    %52 = arith.mulf %49, %51 : vector<8x256xf32>
    %c8_45 = arith.constant 8 : index
    %c0_46 = arith.constant 0 : index
    %53 = vector.load %arg9[%c8_45, %c0_46] : memref<72x256xf32, #tpu.memory_space<vmem>>, vector<8x256xf32>
    tpu.vector_store %arg9[%c8_45, %c0_46], %52 {strides = array<i32>} : memref<72x256xf32, #tpu.memory_space<vmem>>, vector<8x256xf32>,
    %c15_i32_47 = arith.constant 15 : i32
    %54 = tpu.dynamic_rotate %40 by %c15_i32_47 dim 1 : vector<8x256xf32>, i32 -> vector<8x256xf32>
    %c2_48 = arith.constant 2 : index
    %c0_49 = arith.constant 0 : index
    %55 = vector.load %arg2[%c2_48, %c0_49] : memref<9x256xf32, #tpu.memory_space<vmem>>, vector<1x256xf32>
    %56 = vector.broadcast %55 : vector<1x256xf32> to vector<8x256xf32>
    %57 = arith.mulf %54, %56 : vector<8x256xf32>
    %c16 = arith.constant 16 : index
    %c0_50 = arith.constant 0 : index
    %58 = vector.load %arg9[%c16, %c0_50] : memref<72x256xf32, #tpu.memory_space<vmem>>, vector<8x256xf32>
    tpu.vector_store %arg9[%c16, %c0_50], %57 {strides = array<i32>} : memref<72x256xf32, #tpu.memory_space<vmem>>, vector<8x256xf32>,
    %c1_i32_51 = arith.constant 1 : i32
    %59 = tpu.dynamic_rotate %40 by %c1_i32_51 dim 1 : vector<8x256xf32>, i32 -> vector<8x256xf32>
    %c3_52 = arith.constant 3 : index
    %c0_53 = arith.constant 0 : index
    %60 = vector.load %arg2[%c3_52, %c0_53] : memref<9x256xf32, #tpu.memory_space<vmem>>, vector<1x256xf32>
    %61 = vector.broadcast %60 : vector<1x256xf32> to vector<8x256xf32>
    %62 = arith.mulf %59, %61 : vector<8x256xf32>
    %c24 = arith.constant 24 : index
    %c0_54 = arith.constant 0 : index
    %63 = vector.load %arg9[%c24, %c0_54] : memref<72x256xf32, #tpu.memory_space<vmem>>, vector<8x256xf32>
    tpu.vector_store %arg9[%c24, %c0_54], %62 {strides = array<i32>} : memref<72x256xf32, #tpu.memory_space<vmem>>, vector<8x256xf32>,
    %c32 = arith.constant 32 : index
    %c0_55 = arith.constant 0 : index
    %64 = vector.load %arg9[%c32, %c0_55] : memref<72x256xf32, #tpu.memory_space<vmem>>, vector<8x256xf32>
    tpu.vector_store %arg9[%c32, %c0_55], %40 {strides = array<i32>} : memref<72x256xf32, #tpu.memory_space<vmem>>, vector<8x256xf32>,
    %c255_i32_56 = arith.constant 255 : i32
    %65 = tpu.dynamic_rotate %40 by %c255_i32_56 dim 1 : vector<8x256xf32>, i32 -> vector<8x256xf32>
    %c5_57 = arith.constant 5 : index
    %c0_58 = arith.constant 0 : index
    %66 = vector.load %arg2[%c5_57, %c0_58] : memref<9x256xf32, #tpu.memory_space<vmem>>, vector<1x256xf32>
    %67 = vector.broadcast %66 : vector<1x256xf32> to vector<8x256xf32>
    %68 = arith.mulf %65, %67 : vector<8x256xf32>
    %c40 = arith.constant 40 : index
    %c0_59 = arith.constant 0 : index
    %69 = vector.load %arg9[%c40, %c0_59] : memref<72x256xf32, #tpu.memory_space<vmem>>, vector<8x256xf32>
    tpu.vector_store %arg9[%c40, %c0_59], %68 {strides = array<i32>} : memref<72x256xf32, #tpu.memory_space<vmem>>, vector<8x256xf32>,
    %c241_i32_60 = arith.constant 241 : i32
    %70 = tpu.dynamic_rotate %40 by %c241_i32_60 dim 1 : vector<8x256xf32>, i32 -> vector<8x256xf32>
    %c6_61 = arith.constant 6 : index
    %c0_62 = arith.constant 0 : index
    %71 = vector.load %arg2[%c6_61, %c0_62] : memref<9x256xf32, #tpu.memory_space<vmem>>, vector<1x256xf32>
    %72 = vector.broadcast %71 : vector<1x256xf32> to vector<8x256xf32>
    %73 = arith.mulf %70, %72 : vector<8x256xf32>
    %c48 = arith.constant 48 : index
    %c0_63 = arith.constant 0 : index
    %74 = vector.load %arg9[%c48, %c0_63] : memref<72x256xf32, #tpu.memory_space<vmem>>, vector<8x256xf32>
    tpu.vector_store %arg9[%c48, %c0_63], %73 {strides = array<i32>} : memref<72x256xf32, #tpu.memory_space<vmem>>, vector<8x256xf32>,
    %c240_i32_64 = arith.constant 240 : i32
    %75 = tpu.dynamic_rotate %40 by %c240_i32_64 dim 1 : vector<8x256xf32>, i32 -> vector<8x256xf32>
    %c7_65 = arith.constant 7 : index
    %c0_66 = arith.constant 0 : index
    %76 = vector.load %arg2[%c7_65, %c0_66] : memref<9x256xf32, #tpu.memory_space<vmem>>, vector<1x256xf32>
    %77 = vector.broadcast %76 : vector<1x256xf32> to vector<8x256xf32>
    %78 = arith.mulf %75, %77 : vector<8x256xf32>
    %c56 = arith.constant 56 : index
    %c0_67 = arith.constant 0 : index
    %79 = vector.load %arg9[%c56, %c0_67] : memref<72x256xf32, #tpu.memory_space<vmem>>, vector<8x256xf32>
    tpu.vector_store %arg9[%c56, %c0_67], %78 {strides = array<i32>} : memref<72x256xf32, #tpu.memory_space<vmem>>, vector<8x256xf32>,
    %c239_i32_68 = arith.constant 239 : i32
    %80 = tpu.dynamic_rotate %40 by %c239_i32_68 dim 1 : vector<8x256xf32>, i32 -> vector<8x256xf32>
    %c8_69 = arith.constant 8 : index
    %c0_70 = arith.constant 0 : index
    %81 = vector.load %arg2[%c8_69, %c0_70] : memref<9x256xf32, #tpu.memory_space<vmem>>, vector<1x256xf32>
    %82 = vector.broadcast %81 : vector<1x256xf32> to vector<8x256xf32>
    %83 = arith.mulf %80, %82 : vector<8x256xf32>
    %c64 = arith.constant 64 : index
    %c0_71 = arith.constant 0 : index
    %84 = vector.load %arg9[%c64, %c0_71] : memref<72x256xf32, #tpu.memory_space<vmem>>, vector<8x256xf32>
    tpu.vector_store %arg9[%c64, %c0_71], %83 {strides = array<i32>} : memref<72x256xf32, #tpu.memory_space<vmem>>, vector<8x256xf32>,
    %c0_72 = arith.constant 0 : index
    %c0_73 = arith.constant 0 : index
    %85 = vector.load %arg5[%c0_72, %c0_73] : memref<8x72xf32, #tpu.memory_space<vmem>>, vector<8x72xf32>
    %c0_74 = arith.constant 0 : index
    %c0_75 = arith.constant 0 : index
    %86 = vector.load %arg9[%c0_74, %c0_75] : memref<72x256xf32, #tpu.memory_space<vmem>>, vector<72x256xf32>
    %cst_76 = arith.constant dense<0.000000e+00> : vector<8x256xf32>
    %87 = tpu.matmul %85, %86, %cst_76 {dimension_numbers = #tpu.dot_dimension_numbers<[1], [0], [0], [1], [0, 0, 1, 1], [], []>} : vector<8x72xf32>, vector<72x256xf32>, vector<8x256xf32> -> vector<8x256xf32>
    %c0_77 = arith.constant 0 : index
    %c0_78 = arith.constant 0 : index
    %88 = vector.load %arg6[%c0_77, %c0_78] : memref<8x1xf32, #tpu.memory_space<vmem>>, vector<8x1xf32>
    %89 = vector.broadcast %88 : vector<8x1xf32> to vector<8x256xf32>
    %90 = arith.addf %87, %89 : vector<8x256xf32>
    %c0_79 = arith.constant 0 : index
    %c0_80 = arith.constant 0 : index
    %c0_81 = arith.constant 0 : index
    %91 = vector.load %arg8[%c0_79, %c0_80, %c0_81] : memref<1x8x256xf32, #tpu.memory_space<vmem>>, vector<1x8x256xf32>
    %92 = vector.shape_cast %91 : vector<1x8x256xf32> to vector<8x256xf32>
    %93 = vector.shape_cast %90 : vector<8x256xf32> to vector<1x8x256xf32>
    tpu.vector_store %arg8[%c0_79, %c0_80, %c0_81], %93 {strides = array<i32>} : memref<1x8x256xf32, #tpu.memory_space<vmem>>, vector<1x8x256xf32>,
    return
  }
  func.func @transform_0(%arg0: i32) -> (i32, i32, i32) {
    %c0_i32 = arith.constant 0 : i32
    %c0_i32_0 = arith.constant 0 : i32
    %c0_i32_1 = arith.constant 0 : i32
    return %arg0, %c0_i32, %c0_i32_0 : i32, i32, i32
  }
  func.func @transform_1(%arg0: i32) -> (i32, i32) {
    %c0_i32 = arith.constant 0 : i32
    %c0_i32_0 = arith.constant 0 : i32
    %c0_i32_1 = arith.constant 0 : i32
    return %c0_i32, %c0_i32_0 : i32, i32
  }
  func.func @transform_2(%arg0: i32) -> (i32, i32) {
    %c0_i32 = arith.constant 0 : i32
    %c0_i32_0 = arith.constant 0 : i32
    %c0_i32_1 = arith.constant 0 : i32
    return %c0_i32, %c0_i32_0 : i32, i32
  }
  func.func @transform_3(%arg0: i32) -> (i32, i32) {
    %c0_i32 = arith.constant 0 : i32
    %c0_i32_0 = arith.constant 0 : i32
    %c0_i32_1 = arith.constant 0 : i32
    return %c0_i32, %c0_i32_0 : i32, i32
  }
  func.func @transform_4(%arg0: i32) -> (i32, i32) {
    %c0_i32 = arith.constant 0 : i32
    %c0_i32_0 = arith.constant 0 : i32
    %c0_i32_1 = arith.constant 0 : i32
    return %c0_i32, %c0_i32_0 : i32, i32
  }
  func.func @transform_5(%arg0: i32) -> (i32, i32) {
    %c0_i32 = arith.constant 0 : i32
    %c0_i32_0 = arith.constant 0 : i32
    %c0_i32_1 = arith.constant 0 : i32
    return %c0_i32, %c0_i32_0 : i32, i32
  }
  func.func @transform_6(%arg0: i32) -> (i32, i32, i32) {
    %c0_i32 = arith.constant 0 : i32
    %c0_i32_0 = arith.constant 0 : i32
    %c0_i32_1 = arith.constant 0 : i32
    return %arg0, %c0_i32, %c0_i32_0 : i32, i32, i32
  }
  func.func @transform_7(%arg0: i32) -> (i32, i32, i32) {
    %c0_i32 = arith.constant 0 : i32
    %c0_i32_0 = arith.constant 0 : i32
    %c0_i32_1 = arith.constant 0 : i32
    return %arg0, %c0_i32, %c0_i32_0 : i32, i32, i32
  }
}

</mosaic_0001>

<bundles_post_ra>
// kernel: sfeb_forward.1
= control target key start
LH: loop header
LB: loop body
LE: loop exit
PB: predicated region body
PF: predicated region fallthrough
CT: control target
= control target key end

     0   :  { %s1250_s24 = smov 0   ;;  %s1546_s0 = inlined_call_operand.vmem [shape: f32[2,1,256], index: 0, kind: input, shape index: {}]   ;;  %s1547_s1 = inlined_call_operand.vmem [shape: f32[9,256], index: 1, kind: input, shape index: {}]   ;;  %s1548_s2 = inlined_call_operand.vmem [shape: f32[8,9], index: 2, kind: input, shape index: {}]   ;;  %s1549_s3 = inlined_call_operand.vmem [shape: f32[8,1], index: 3, kind: input, shape index: {}]   ;;  %s1550_s4 = inlined_call_operand.vmem [shape: f32[8,72], index: 4, kind: input, shape index: {}]   ;;  %s1551_s5 = inlined_call_operand.vmem [shape: f32[8,1], index: 5, kind: input, shape index: {}]   ;;  %s1552_s6 = inlined_call_operand.vmem [shape: f32[2,8,256], index: 6, kind: output, shape index: {0}]   ;;  %s1553_s7 = inlined_call_operand.vmem [shape: f32[2,8,256], index: 7, kind: output, shape index: {1}]  }
   0x1 LB: > { %s1115_s25 = sadd.s32 4294967295, %s1196_s24   ;;  %p1119_p0 = scmp.ge.s32.totalorder %s1196_s24, 1  ;;  %s1196_s24 = sphi %s1250_s24, %s18_s24  }
   0x2   : > { %p239_p1 = scmp.lt.s32.totalorder %s1196_s24, 3 }
   0x4   : > { %p240_p2 = pnand %p1119_p0, %p239_p1 }
   0x5   : > { %p275_p3 = scmp.lt.s32.totalorder (!%p240_p2), %s1115_s25, 1  ;;  %v291_v0 = vlaneseq (!%p240_p2)  ;;  %s1198_s30 = smov (!%p240_p2), 16   ;;  %v1206_v8 = vmov (!%p240_p2), 0.0   ;;  %v657_v9 = vld [vmem:[%s1549_s3] sm:$0xff] (!%p240_p2)  ;;  %v1207_v10 = vmov (!%p240_p2), 0   ;;  %vm667_vm9 = vcmask (!%p240_p2), 1040384  }
   0x6   : > { %243 = sbr.rel (%p240_p2) target bundleno = 769 (0x301), region = 44  ;;  %s1199_s8 = smov (!%p240_p2), 17   ;;  %738 = vmatprep.mubr.f32.mxu0 (!%p240_p2), %v1206_v8  ;;  %1018 = vmatprep.mubr.f32.mxu1 (!%p240_p2), %v1206_v8  ;;  %v1208_v11 = vmov (!%p240_p2), 1966171168   ;;  %vm1209_vm10 = vmmov (!%p240_p2), 1   ;;  %vm663_vm12 = vcmask (!%p240_p2), 72704  }
   0x7   : > { %v292_v1 = vshrl.u32 (!%p240_p2), %v291_v0, 7  ;;  %vm1268_vm0 = vcmp.lt.s32.totalorder (!%p240_p2), %v291_v0, 256  ;;  %s1200_s9 = smov (!%p240_p2), 15   ;;  %s1201_s10 = smov (!%p240_p2), 1   ;;  %1189 = vset.pattern.permute.xlu0 (!%p240_p2), %v1207_v10  ;;  %v328_v12 = vunpack.c.l.s4 (!%p240_p2), %v1208_v11  ;;  %v1295_v13 = vand.u32 (!%p240_p2), 127, %v291_v0  ;;  %vm1148_vm11 = vmpackc.low (!%p240_p2), %vm667_vm9, %vm1209_vm10 }
   0x8   : > { %s1202_s11 = smov (!%p240_p2), 127   ;;  %s1203_s12 = smov (!%p240_p2), 113   ;;  %v1125_v14 = vld [vmem:[%s1547_s1 + $0x1] ss:$8 sm:$0x3] (!%p240_p2)  ;;  %vm950_vm13 = vcmask (!%p240_p2), 588800  }
   0x9   : > { %v1261_v2 = vsub.s32 (!%p240_p2), 0, %v292_v1  ;;  %v1266_v3 = vsub.s32 (!%p240_p2), 1, %v292_v1  ;;  %s1204_s13 = smov (!%p240_p2), 112   ;;  %s1205_s14 = smov (!%p240_p2), 111   ;;  %v329_v18 = vunpack.c.0.s8 (!%p240_p2), %v328_v12  ;;  %vm352_vm1 = vcmp.lt.s32.totalorder (!%p240_p2), %v1295_v13, 16 }
   0xa   : > { %v310_v15 = vld [vmem:[%s1547_s1] ss:$8 sm:$0x3] (!%p240_p2)  ;;  %vm307_vm2 = vcmp.lt.s32.totalorder (!%p240_p2), %v1295_v13, 17  ;;  %vm395_vm3 = vcmp.lt.s32.totalorder (!%p240_p2), %v1295_v13, 15  ;;  %vm438_vm4 = vcmp.lt.s32.totalorder (!%p240_p2), %v1295_v13, 1 }
   0xb   : > { %v1126_v19 = vld [vmem:[%s1547_s1 + $0x2] ss:$8 sm:$0x3] (!%p240_p2)  ;;  %v361_v20 = vrot.slane (!%p240_p2), %v1125_v14, %v1261_v2  ;;  %v365_v21 = vrot.slane (!%p240_p2), %v1125_v14, %v1266_v3  ;;  %v315_v22 = vrot.slane (!%p240_p2), %v310_v15, %v1261_v2  ;;  %v319_v23 = vrot.slane (!%p240_p2), %v310_v15, %v1266_v3  ;;  %v1127_v37 = vld [vmem:[%s1547_s1 + $0x3] ss:$8 sm:$0x3] (!%p240_p2) }
   0xc   : > { %v1312_v24 = vsub.s32 (!%p240_p2), %v329_v18, %v292_v1  ;;  %v404_v27 = vrot.slane (!%p240_p2), %v1126_v19, %v1261_v2  ;;  %v408_v28 = vrot.slane (!%p240_p2), %v1126_v19, %v1266_v3  ;;  %v447_v44 = vrot.slane (!%p240_p2), %v1127_v37, %v1261_v2  ;;  %v1128_v50 = vld [vmem:[%s1547_s1 + $0x5] ss:$8 sm:$0x3] (!%p240_p2)  ;;  %v1129_v63 = vld [vmem:[%s1547_s1 + $0x6] ss:$8 sm:$0x3] (!%p240_p2) }
   0xd   : > { %s1557_s25 = smov (!%p275_p3, %s1115_s25), 1  ;;  %v451_v45 = vrot.slane %v1127_v37, %v1266_v3  ;;  %vm484_vm5 = vcmp.lt.s32.totalorder %v1295_v13, 127  ;;  %v493_v58 = vrot.slane %v1128_v50, %v1261_v2  ;;  %v497_v62 = vrot.slane %v1128_v50, %v1266_v3  ;;  %v1130_v15 = vld [vmem:[%s1547_s1 + $0x7] ss:$8 sm:$0x3] }
   0xe   : > { %s1120_s26 = sshll.u32 %s1557_s25, 1  ;;  %vm527_vm6 = vcmp.lt.s32.totalorder %v1295_v13, 113  ;;  %v540_v14 = vrot.slane %v1129_v63, %v1266_v3  ;;  %vm570_vm7 = vcmp.lt.s32.totalorder %v1295_v13, 112  ;;  %vm613_vm8 = vcmp.lt.s32.totalorder %v1295_v13, 111  ;;  %s1145_s22 = sshll.u32 %s1557_s25, 4 }
   0xf   : > { %s278_s29 = scalar_lea.vmem %s1546_s0, %s1120_s26  ;;  %s283_s27 = scalar_lea.vmem %s1552_s6, %s1145_s22 }
  0x10   : > { %v289_v4 = vld [vmem:[%s278_s29] sm:$0x3] }
  0x11   : > { %v294_v6 = vrot.slane %v289_v4, %v1261_v2  ;;  %478 = vst.msk [vmem:[#allocation2 + $0x4] ss:$8 sm:$0x3] %vm1268_vm0, %v289_v4  ;;  %v298_v7 = vrot.slane %v289_v4, %v1266_v3 }
  0x13   : > { %348 = vrot.lane.b32.xlu1 %v294_v6, %s1198_s30  ;;  %301 = vrot.lane.b32.xlu0 %v294_v6, %s1199_s8 }
  0x17   : > { %350 = vrot.lane.b32.xlu1 %v298_v7, %s1198_s30  ;;  %303 = vrot.lane.b32.xlu0 %v298_v7, %s1199_s8 }
  0x1b   : > { %393 = vrot.lane.b32.xlu1 %v298_v7, %s1200_s9  ;;  %391 = vrot.lane.b32.xlu0 %v294_v6, %s1200_s9 }
  0x1f   : > { %436 = vrot.lane.b32.xlu1 %v298_v7, %s1201_s10  ;;  %434 = vrot.lane.b32.xlu0 %v294_v6, %s1201_s10 }
  0x23   : > { %482 = vrot.lane.b32.xlu1 %v298_v7, %s1202_s11  ;;  %480 = vrot.lane.b32.xlu0 %v294_v6, %s1202_s11 }
  0x27   : > { %525 = vrot.lane.b32.xlu1 %v298_v7, %s1203_s12  ;;  %523 = vrot.lane.b32.xlu0 %v294_v6, %s1203_s12 }
  0x2b   : > { %568 = vrot.lane.b32.xlu1 %v298_v7, %s1204_s13  ;;  %566 = vrot.lane.b32.xlu0 %v294_v6, %s1204_s13 }
  0x2f   : > { %611 = vrot.lane.b32.xlu1 %v298_v7, %s1205_s14  ;;  %609 = vrot.lane.b32.xlu0 %v294_v6, %s1205_s14 }
  0x33   : > { %660 = vperm.xlu0 %1189, %v657_v9   ;;  %v536_v9 = vrot.slane %v1129_v63, %v1261_v2  ;;  %v944_v63 = vld [vmem:[%s1551_s5] sm:$0xff] }
  0x85   : > { %v349_v16 = vpop.permute.xlu1 %348  ;;  %v302_v17 = vpop.permute.xlu0 %301 }
  0x89   : > { %v351_v25 = vpop.permute.xlu1 %350  ;;  %v304_v26 = vpop.permute.xlu0 %303 }
  0x8a   : > { %v353_v29 = vsel %vm352_vm1, %v349_v16, %v351_v25  ;;  %v354_v30 = vsel %vm352_vm1, %v351_v25, %v349_v16  ;;  %v308_v31 = vsel %vm307_vm2, %v302_v17, %v304_v26  ;;  %v309_v32 = vsel %vm307_vm2, %v304_v26, %v302_v17 }
  0x8b   : > { %v368_v33 = vmul.f32 %v361_v20, %v354_v30  ;;  %v369_v34 = vmul.f32 %v365_v21, %v353_v29  ;;  %v322_v35 = vmul.f32 %v315_v22, %v309_v32  ;;  %v323_v36 = vmul.f32 %v319_v23, %v308_v31 }
  0x8c   : > { %v579_v22 = vrot.slane %v1130_v15, %v1261_v2 }
  0x8d   : > { %v372_v38 = vcombine.low %v368_v33, %v369_v34  ;;  %v326_v39 = vcombine.low %v322_v35, %v323_v36  ;;  %v394_v40 = vpop.permute.xlu1 %393  ;;  %v392_v41 = vpop.permute.xlu0 %391 }
  0x8e   : > { %v396_v42 = vsel %vm395_vm3, %v392_v41, %v394_v40  ;;  %v397_v43 = vsel %vm395_vm3, %v394_v40, %v392_v41 }
  0x8f   : > { %v379_v46 = vrot.slane %v372_v38, %v1312_v24  ;;  %v333_v47 = vrot.slane %v326_v39, %v1312_v24  ;;  %v411_v48 = vmul.f32 %v404_v27, %v397_v43  ;;  %v412_v49 = vmul.f32 %v408_v28, %v396_v42  ;;  %v1131_v28 = vld [vmem:[%s1547_s1 + $0x10] ss:$8 sm:$0x3] }
  0x90   : > { %v583_v27 = vrot.slane %v1130_v15, %v1266_v3  ;;  %v622_v35 = vrot.slane %v1131_v28, %v1261_v2  ;;  %v626_v39 = vrot.slane %v1131_v28, %v1266_v3  ;;  %v1137_v28 = vld [vmem:[%s1547_s1 + $0x3] ss:$8 sm:$0x3] }
  0x91   : > { %v386_v51 = vrot.slane %v379_v46, %v1312_v24  ;;  %v340_v52 = vrot.slane %v333_v47, %v1312_v24  ;;  %v415_v53 = vcombine.low %v411_v48, %v412_v49  ;;  %v437_v54 = vpop.permute.xlu1 %436  ;;  %v435_v55 = vpop.permute.xlu0 %434 }
  0x92   : > { %v439_v56 = vsel %vm438_vm4, %v435_v55, %v437_v54  ;;  %v440_v57 = vsel %vm438_vm4, %v437_v54, %v435_v55 }
  0x93   : > { %389 = vst.msk [vmem:[#allocation2 + $0x1] ss:$8 sm:$0x3] %vm1268_vm0, %v386_v51  ;;  %346 = vst.msk [vmem:[#allocation2] ss:$8 sm:$0x3] %vm1268_vm0, %v340_v52  ;;  %v422_v59 = vrot.slane %v415_v53, %v1312_v24  ;;  %v454_v60 = vmul.f32 %v447_v44, %v440_v57  ;;  %v455_v61 = vmul.f32 %v451_v45, %v439_v56 }
  0x95   : > { %v429_v0 = vrot.slane %v422_v59, %v1312_v24  ;;  %v458_v1 = vcombine.low %v454_v60, %v455_v61  ;;  %v483_v4 = vpop.permute.xlu1 %482  ;;  %v481_v6 = vpop.permute.xlu0 %480 }
  0x96   : > { %v485_v7 = vsel %vm484_vm5, %v481_v6, %v483_v4  ;;  %v486_v8 = vsel %vm484_vm5, %v483_v4, %v481_v6 }
  0x97   : > { %432 = vst.msk [vmem:[#allocation2 + $0x2] ss:$8 sm:$0x3] %vm1268_vm0, %v429_v0  ;;  %v465_v10 = vrot.slane %v458_v1, %v1312_v24  ;;  %v500_v11 = vmul.f32 %v493_v58, %v485_v7  ;;  %v501_v12 = vmul.f32 %v497_v62, %v486_v8  ;;  %v753_v0 = vld [vmem:[%s1547_s1] ss:$8 sm:$0x3] }
  0x98   : > { %v758_v6 = vrot.slane %v753_v0, %v1261_v2  ;;  %v762_v7 = vrot.slane %v753_v0, %v1266_v3  ;;  %v1135_v8 = vld [vmem:[%s1547_s1 + $0x1] ss:$8 sm:$0x3] }
  0x99   : > { %v472_v16 = vrot.slane %v465_v10, %v1312_v24  ;;  %v504_v17 = vcombine.low %v500_v11, %v501_v12  ;;  %v526_v18 = vpop.permute.xlu1 %525  ;;  %v524_v19 = vpop.permute.xlu0 %523 }
  0x9a   : > { %v528_v20 = vsel %vm527_vm6, %v524_v19, %v526_v18  ;;  %v529_v21 = vsel %vm527_vm6, %v526_v18, %v524_v19  ;;  %v1136_v18 = vld [vmem:[%s1547_s1 + $0x2] ss:$8 sm:$0x3] }
  0x9b   : > { %475 = vst.msk [vmem:[#allocation2 + $0x3] ss:$8 sm:$0x3] %vm1268_vm0, %v472_v16  ;;  %v511_v23 = vrot.slane %v504_v17, %v1312_v24  ;;  %v543_v25 = vmul.f32 %v536_v9, %v528_v20  ;;  %v544_v26 = vmul.f32 %v540_v14, %v529_v21  ;;  %v780_v16 = vrot.slane %v1135_v8, %v1261_v2 }
  0x9c   : > { %v784_v17 = vrot.slane %v1135_v8, %v1266_v3 }
  0x9d   : > { %v518_v29 = vrot.slane %v511_v23, %v1312_v24  ;;  %v547_v30 = vcombine.low %v543_v25, %v544_v26  ;;  %v569_v31 = vpop.permute.xlu1 %568  ;;  %v567_v32 = vpop.permute.xlu0 %566  ;;  %v802_v26 = vrot.slane %v1136_v18, %v1261_v2 }
  0x9e   : > { %v571_v33 = vsel %vm570_vm7, %v567_v32, %v569_v31  ;;  %v572_v34 = vsel %vm570_vm7, %v569_v31, %v567_v32 }
  0x9f   : > { %521 = vst.msk [vmem:[#allocation2 + $0x5] ss:$8 sm:$0x3] %vm1268_vm0, %v518_v29  ;;  %v554_v36 = vrot.slane %v547_v30, %v1312_v24  ;;  %v586_v37 = vmul.f32 %v579_v22, %v571_v33  ;;  %v587_v38 = vmul.f32 %v583_v27, %v572_v34  ;;  %v806_v27 = vrot.slane %v1136_v18, %v1266_v3 }
  0xa1   : > { %v561_v40 = vrot.slane %v554_v36, %v1312_v24  ;;  %v590_v41 = vcombine.low %v586_v37, %v587_v38  ;;  %v612_v42 = vpop.permute.xlu1 %611  ;;  %v610_v43 = vpop.permute.xlu0 %609  ;;  %v824_v37 = vrot.slane %v1137_v28, %v1261_v2  ;;  %v828_v38 = vrot.slane %v1137_v28, %v1266_v3 }
  0xa2   : > { %v614_v44 = vsel %vm613_vm8, %v610_v43, %v612_v42  ;;  %v615_v45 = vsel %vm613_vm8, %v612_v42, %v610_v43 }
  0xa3   : > { %564 = vst.msk [vmem:[#allocation2 + $0x6] ss:$8 sm:$0x3] %vm1268_vm0, %v561_v40  ;;  %v597_v46 = vrot.slane %v590_v41, %v1312_v24  ;;  %v629_v47 = vmul.f32 %v622_v35, %v614_v44  ;;  %v630_v48 = vmul.f32 %v626_v39, %v615_v45  ;;  %v1138_v39 = vld [vmem:[%s1547_s1 + $0x5] ss:$8 sm:$0x3] }
  0xa4   : > { %v848_v45 = vrot.slane %v1138_v39, %v1261_v2 }
  0xa5   : > { %v604_v49 = vrot.slane %v597_v46, %v1312_v24  ;;  %v633_v50 = vcombine.low %v629_v47, %v630_v48  ;;  %v852_v46 = vrot.slane %v1138_v39, %v1266_v3  ;;  %v1139_v47 = vld [vmem:[%s1547_s1 + $0x6] ss:$8 sm:$0x3] }
  0xa7   : > { %607 = vst.msk [vmem:[#allocation2 + $0x7] ss:$8 sm:$0x3] %vm1268_vm0, %v604_v49  ;;  %v640_v51 = vrot.slane %v633_v50, %v1312_v24 }
  0xa9   : > { %v647_v52 = vrot.slane %v640_v51, %v1312_v24  ;;  %v652_v24 = vld [vmem:[%s1548_s2] sm:$0xff] }
  0xab   : > { %650 = vst.msk [vmem:[#allocation2 + $0x10] ss:$8 sm:$0x3] %vm1268_vm0, %v647_v52 }
  0xae   : > { %v654_v53 = vld [vmem:[#allocation2 + $0x8] sm:$0xff]  ;;  %v653_v55 = vld [vmem:[#allocation2] sm:$0xff] }
  0xb2   : > { %v656_v54 = vld [vmem:[#allocation2 + $0x18] sm:$0x1]  ;;  %v655_v56 = vld [vmem:[#allocation2 + $0x10] sm:$0x1]  ;;  %v661_v5 = vpop.permute.xlu0 %660 }
  0xb3   : > { %v1147_v57 = vpack.c.bf16 %v656_v54, %v654_v53  ;;  %v1150_v58 = vpack.c.bf16 %v655_v56, %v653_v55  ;;  %v870_v56 = vrot.slane %v1139_v47, %v1261_v2 }
  0xb5   : > { %1149 = vmatprep.subr.msk.bf16.mxu0 %vm1148_vm11, %v1147_v57  ;;  %v874_v57 = vrot.slane %v1139_v47, %v1266_v3 }
  0xb6   : > { %1152 = vmatpush1.bf16.msk.msra.mxu0 %vm1148_vm11, %v1150_v58  ;;  %v1140_v58 = vld [vmem:[%s1547_s1 + $0x7] ss:$8 sm:$0x3] }
  0xb9   : > { %1134 = vmatmul.mubr.msk.f32.vlgmr.msra.gmra.mrb[0].mxu0 %vm663_vm12, %v652_v24 }
 0x18c   : > { %v740_v59 = vpop.f32.mrb[0].mxu0 }
 0x18d   : > { %v1420_v60 = vadd.f32 %v740_v59, %v661_v5  ;;  %v742_v61 = vpop.f32.mrb[1].mxu0 }
 0x18e   : > { %v1422_v62 = vadd.f32 %v742_v61, %v661_v5 }
 0x18f   : > { %769 = vrot.lane.b32.xlu0 %v1420_v60, %s1198_s30  ;;  %747 = vrot.lane.b32.xlu1 %v1420_v60, %s1199_s8  ;;  %745 = vst [vmem:[%s283_s27] sm:$0xff] %v1420_v60 }
 0x190   : > { %746 = vst [vmem:[%s283_s27 + $0x8] sm:$0xff] %v1422_v62 }
 0x193   : > { %791 = vrot.lane.b32.xlu0 %v1420_v60, %s1200_s9  ;;  %749 = vrot.lane.b32.xlu1 %v1422_v62, %s1199_s8 }
 0x197   : > { %813 = vrot.lane.b32.xlu0 %v1420_v60, %s1201_s10  ;;  %771 = vrot.lane.b32.xlu1 %v1422_v62, %s1198_s30 }
 0x19b   : > { %837 = vrot.lane.b32.xlu0 %v1420_v60, %s1202_s11  ;;  %793 = vrot.lane.b32.xlu1 %v1422_v62, %s1200_s9  ;;  %s288_s9 = scalar_lea.vmem %s1553_s7, %s1145_s22 }
 0x19f   : > { %859 = vrot.lane.b32.xlu0 %v1420_v60, %s1203_s12  ;;  %815 = vrot.lane.b32.xlu1 %v1422_v62, %s1201_s10 }
 0x1a3   : > { %881 = vrot.lane.b32.xlu0 %v1420_v60, %s1204_s13  ;;  %839 = vrot.lane.b32.xlu1 %v1422_v62, %s1202_s11 }
 0x1a7   : > { %903 = vrot.lane.b32.xlu0 %v1420_v60, %s1205_s14  ;;  %861 = vrot.lane.b32.xlu1 %v1422_v62, %s1203_s12 }
 0x1ab   : > { %947 = vperm.xlu0 %1189, %v944_v63   ;;  %883 = vrot.lane.b32.xlu1 %v1422_v62, %s1204_s13 }
 0x1af   : > { %905 = vrot.lane.b32.xlu1 %v1422_v62, %s1205_s14 }
 0x201   : > { %v770_v1 = vpop.permute.xlu0 %769  ;;  %v748_v4 = vpop.permute.xlu1 %747 }
 0x205   : > { %v792_v9 = vpop.permute.xlu0 %791  ;;  %v750_v10 = vpop.permute.xlu1 %749 }
 0x206   : > { %v751_v11 = vsel %vm307_vm2, %v748_v4, %v750_v10  ;;  %v752_v12 = vsel %vm307_vm2, %v750_v10, %v748_v4 }
 0x207   : > { %v765_v14 = vmul.f32 %v758_v6, %v752_v12  ;;  %v766_v15 = vmul.f32 %v762_v7, %v751_v11  ;;  %v892_v6 = vrot.slane %v1140_v58, %v1261_v2  ;;  %v896_v7 = vrot.slane %v1140_v58, %v1266_v3 }
 0x209   : > { %767 = vst [vmem:[#allocation2] sm:$0xff] %v765_v14  ;;  %768 = vst [vmem:[#allocation2 + $0x8] sm:$0xff] %v766_v15  ;;  %v814_v19 = vpop.permute.xlu0 %813  ;;  %v772_v20 = vpop.permute.xlu1 %771 }
 0x20a   : > { %v773_v21 = vsel %vm352_vm1, %v770_v1, %v772_v20  ;;  %v774_v22 = vsel %vm352_vm1, %v772_v20, %v770_v1 }
 0x20b   : > { %v787_v23 = vmul.f32 %v780_v16, %v774_v22  ;;  %v788_v25 = vmul.f32 %v784_v17, %v773_v21 }
 0x20d   : > { %789 = vst [vmem:[#allocation2 + $0x10] sm:$0xff] %v787_v23  ;;  %790 = vst [vmem:[#allocation2 + $0x18] sm:$0xff] %v788_v25  ;;  %v794_v29 = vpop.permute.xlu1 %793  ;;  %v1153_v30 = vpack.c.bf16 %v788_v25, %v766_v15  ;;  %v1155_v31 = vpack.c.bf16 %v787_v23, %v765_v14  ;;  %v838_v34 = vpop.permute.xlu0 %837 }
 0x20e   : > { %v795_v32 = vsel %vm395_vm3, %v792_v9, %v794_v29  ;;  %v796_v33 = vsel %vm395_vm3, %v794_v29, %v792_v9 }
 0x20f   : > { %v809_v35 = vmul.f32 %v802_v26, %v796_v33  ;;  %v810_v36 = vmul.f32 %v806_v27, %v795_v32  ;;  %1154 = vmatprep.subr.bf16.mxu1 %v1153_v30 }
 0x210   : > { %1156 = vmatpush1.bf16.msra.mxu1 %v1155_v31 }
 0x211   : > { %v816_v40 = vpop.permute.xlu1 %815  ;;  %v860_v48 = vpop.permute.xlu0 %859 }
 0x212   : > { %v817_v41 = vsel %vm438_vm4, %v814_v19, %v816_v40  ;;  %v818_v42 = vsel %vm438_vm4, %v816_v40, %v814_v19 }
 0x213   : > { %v831_v43 = vmul.f32 %v824_v37, %v818_v42  ;;  %v832_v44 = vmul.f32 %v828_v38, %v817_v41 }
 0x215   : > { %v840_v49 = vpop.permute.xlu1 %839  ;;  %v1157_v50 = vpack.c.bf16 %v832_v44, %v810_v36  ;;  %v1159_v51 = vpack.c.bf16 %v831_v43, %v809_v35  ;;  %v882_v0 = vpop.permute.xlu0 %881 }
 0x216   : > { %v841_v52 = vsel %vm484_vm5, %v838_v34, %v840_v49  ;;  %v842_v53 = vsel %vm484_vm5, %v840_v49, %v838_v34 }
 0x217   : > { %v855_v54 = vmul.f32 %v848_v45, %v841_v52  ;;  %v856_v55 = vmul.f32 %v852_v46, %v842_v53  ;;  %1158 = vmatprep.subr.bf16.mxu1 %v1157_v50 }
 0x218   : > { %1160 = vmatpush1.bf16.msra.mxu1 %v1159_v51 }
 0x219   : > { %v862_v24 = vpop.permute.xlu1 %861  ;;  %v1161_v5 = vpack.c.bf16 %v856_v55, %v1422_v62  ;;  %v1163_v59 = vpack.c.bf16 %v855_v54, %v1420_v60  ;;  %v1141_v62 = vld [vmem:[%s1547_s1 + $0x10] ss:$8 sm:$0x3]  ;;  %v904_v15 = vpop.permute.xlu0 %903 }
 0x21a   : > { %v863_v61 = vsel %vm527_vm6, %v860_v48, %v862_v24  ;;  %v864_v63 = vsel %vm527_vm6, %v862_v24, %v860_v48  ;;  %v914_v12 = vrot.slane %v1141_v62, %v1261_v2  ;;  %v918_v14 = vrot.slane %v1141_v62, %v1266_v3  ;;  %v925_v2 = vld [vmem:[%s1550_s4] sm:$0xff] }
 0x21b   : > { %v877_v1 = vmul.f32 %v870_v56, %v863_v61  ;;  %v878_v4 = vmul.f32 %v874_v57, %v864_v63  ;;  %1162 = vmatprep.subr.bf16.mxu1 %v1161_v5 }
 0x21c   : > { %1164 = vmatpush1.bf16.msra.mxu1 %v1163_v59 }
 0x21d   : > { %v884_v60 = vpop.permute.xlu1 %883 }
 0x21e   : > { %v885_v8 = vsel %vm570_vm7, %v882_v0, %v884_v60  ;;  %v886_v9 = vsel %vm570_vm7, %v884_v60, %v882_v0 }
 0x21f   : > { %v899_v10 = vmul.f32 %v892_v6, %v885_v8  ;;  %v900_v11 = vmul.f32 %v896_v7, %v886_v9 }
 0x221   : > { %v906_v16 = vpop.permute.xlu1 %905  ;;  %v1165_v17 = vpack.c.bf16 %v900_v11, %v878_v4  ;;  %v1167_v18 = vpack.c.bf16 %v899_v10, %v877_v1 }
 0x222   : > { %v907_v19 = vsel %vm613_vm8, %v904_v15, %v906_v16  ;;  %v908_v20 = vsel %vm613_vm8, %v906_v16, %v904_v15 }
 0x223   : > { %v921_v21 = vmul.f32 %v914_v12, %v907_v19  ;;  %v922_v22 = vmul.f32 %v918_v14, %v908_v20  ;;  %1166 = vmatprep.subr.bf16.mxu1 %v1165_v17 }
 0x224   : > { %1168 = vmatpush1.bf16.msra.mxu1 %v1167_v18 }
 0x225   : > { %970 = vmatprep.subr.mxu1 %v922_v22 }
 0x228   : > { %971 = vmatpush1.msra.mxu1 %v921_v21 }
 0x229   : > { %1142 = vmatmul.mubr.msk.f32.vlgmr.msra.gmra.mrb[0].mxu1 %vm950_vm13, %v925_v2 }
 0x22a   : > { %v948_v3 = vpop.permute.xlu0 %947 }
 0x2fc   : > { %v1020_v13 = vpop.f32.mrb[0].mxu1 }
 0x2fd   : > { %v1021_v23 = vadd.f32 %v1020_v13, %v948_v3  ;;  %v1022_v25 = vpop.f32.mrb[1].mxu1 }
 0x2fe   : > { %v1023_v26 = vadd.f32 %v1022_v25, %v948_v3 }
 0x2ff   : > { %1025 = vst [vmem:[%s288_s9] sm:$0xff] %v1021_v23 }
 0x300   : > { %1026 = vst [vmem:[%s288_s9 + $0x8] sm:$0xff] %v1023_v26 }
 0x301 PF: > { %s18_s24 = sadd.s32 1, %s1196_s24  }
 0x302   : > { %p15_p4 = scmp.ge.s32.totalorder %s18_s24, 4  }
 0x304   :  { %17 = sbr.rel (!%p15_p4) target bundleno = 1 (0x1), region = 101 }

</bundles_post_ra>
